<compile_context>
chip_gen: v5e
topology: v5e:2x2
jax: 0.10.0
libtpu: 0.0.40
codegen_flags: <defaults>
</compile_context>

<pallas_src>
import functools

import jax
import jax.numpy as jnp
from jax.experimental import pallas as pl
from jax.experimental.pallas import tpu as pltpu


def attr_embed_kernel(attr_ref, pa_ref, w_ref, out_ref):
    tb, n_attrs = attr_ref.shape
    emb_dim = pa_ref.shape[1]
    seq_len = w_ref.shape[0]

    a = attr_ref[...].astype(jnp.float32)               # (tb, n_attrs)
    pa = pa_ref[...]                                     # (n_attrs, emb_dim)  read once per step
    w = w_ref[...]                                       # (seq_len, n_attrs)  read once per step

    # cond[t, a, e] = silu(attr[t, a] * pa^T[a, e]); fully vectorized, lane dim = emb_dim.
    c = a[:, :, None] * pa[None, :, :]                   # (tb, n_attrs, emb_dim)
    cond = c * jax.nn.sigmoid(c)                         # SiLU (sigmoid -> EUP slot)

    # Batched MXU matmul: (tb, seq_len, n_attrs) x (tb, n_attrs, emb_dim) -> (tb, seq_len, emb_dim).
    # Output is produced directly in its final (t, s, e) layout -> single unmasked lane-dense store.
    wb = jnp.broadcast_to(w[None, :, :], (tb, seq_len, n_attrs))
    out = jax.lax.dot_general(
        wb, cond,
        dimension_numbers=(((2,), (1,)), ((0,), (0,))),
        preferred_element_type=jnp.float32,
    )                                                    # (tb, seq_len, emb_dim)

    out_ref[...] = out.astype(out_ref.dtype)


@functools.partial(jax.jit, static_argnames=("tb",))
def attr_embedding(attr, pa, w, *, tb=8):
    """attr: (B, n_attrs) int32; pa: (emb_dim, n_attrs) f32; w: (seq_len, n_attrs) f32.

    Returns (B, seq_len, emb_dim) f32, matching the PyTorch module output layout.
    """
    B, n_attrs = attr.shape
    emb_dim = pa.shape[0]
    seq_len = w.shape[0]

    # tb must be a multiple of 8 (sublane constraint on the attr BlockSpec).
    assert tb % 8 == 0, "tb must be a multiple of 8"

    # Pad batch to a multiple of tb; padded rows are all-zero and discarded afterwards.
    n_steps = pl.cdiv(B, tb)
    B_pad = n_steps * tb
    if B_pad != B:
        attr = jnp.pad(attr, ((0, B_pad - B), (0, 0)))

    pa_t = jnp.transpose(pa)                              # (n_attrs, emb_dim): lane-dense RHS layout

    out = pl.pallas_call(
        attr_embed_kernel,
        out_shape=jax.ShapeDtypeStruct((B_pad, seq_len, emb_dim), jnp.float32),
        grid=(n_steps,),
        in_specs=[
            pl.BlockSpec((tb, n_attrs), lambda i: (i, 0)),        # tb attr rows per step
            pl.BlockSpec((n_attrs, emb_dim), lambda i: (0, 0)),   # pa^T (whole, resident)
            pl.BlockSpec((seq_len, n_attrs), lambda i: (0, 0)),   # linear weight (whole)
        ],
        out_specs=pl.BlockSpec((tb, seq_len, emb_dim), lambda i: (i, 0, 0)),
        compiler_params=pltpu.CompilerParams(
            dimension_semantics=("parallel",)),
    )(attr, pa_t, w)

    return out[:B] if B_pad != B else out


def attr_embedding_ref(attr, pa, w):
    """Pure-JAX reference mirroring the PyTorch forward."""
    cond = attr[:, None, :].astype(jnp.float32) * pa[None]   # (B, emb_dim, n_attrs)
    cond = cond * jax.nn.sigmoid(cond)                        # SiLU
    cond = jnp.einsum("bed,sd->bes", cond, w)                 # Linear (no bias)
    return jnp.swapaxes(cond, -1, -2)                         # (B, seq_len, emb_dim)


if __name__ == "__main__":
    # Small shapes consistent with the module (emb_dim=640, seq_len=77, n_attrs=40 in prod).
    # B=10 is deliberately not a multiple of tb=8 to exercise padding + a 2-step grid.
    B, emb_dim, seq_len, n_attrs = 10, 64, 16, 8

    key = jax.random.PRNGKey(0)
    k_pa, k_w, k_attr = jax.random.split(key, 3)

    # pa ~ torch.rand -> U[0, 1); squeeze the leading 1 of (1, emb_dim, n_attrs).
    pa = jax.random.uniform(k_pa, (emb_dim, n_attrs), dtype=jnp.float32)
    # Linear weight (seq_len, n_attrs): torch default U(-1/sqrt(in), 1/sqrt(in)).
    bound = 1.0 / jnp.sqrt(jnp.float32(n_attrs))
    w = jax.random.uniform(k_w, (seq_len, n_attrs), dtype=jnp.float32,
                           minval=-bound, maxval=bound)
    # attr: int attributes (e.g. binary flags).
    attr = jax.random.randint(k_attr, (B, n_attrs), 0, 2, dtype=jnp.int32)

    out = attr_embedding(attr, pa, w, tb=8)
    out = jax.block_until_ready(out)

    ref = attr_embedding_ref(attr, pa, w)
    assert out.shape == (B, seq_len, emb_dim), out.shape
    assert jnp.allclose(out, ref, atol=1e-5, rtol=1e-5), "mismatch vs reference"

    print("KERNEL_OK")
</pallas_src>

<mosaic_0001>
module attributes {stable_mosaic.version = 11 : i64} {
  func.func @attr_embed_kernel(%arg0: i32, %arg1: memref<8x8xi32, #tpu.memory_space<vmem>>, %arg2: memref<8x64xf32, #tpu.memory_space<vmem>>, %arg3: memref<16x8xf32, #tpu.memory_space<vmem>>, %arg4: memref<8x16x64xf32, #tpu.memory_space<vmem>>) attributes {dimension_semantics = [#tpu.dimension_semantics<parallel>], iteration_bounds = array<i64: 2>, scalar_prefetch = 0 : i64, scratch_operands = 0 : i64, tpu.core_type = #tpu.core_type<tc>, window_params = [{transform_indices = @transform_0, window_bounds = array<i64: 8, 8>}, {pipeline_mode = #tpu.pipeline_mode<synchronous>, transform_indices = @transform_1, window_bounds = array<i64: 8, 64>}, {pipeline_mode = #tpu.pipeline_mode<synchronous>, transform_indices = @transform_2, window_bounds = array<i64: 16, 8>}, {transform_indices = @transform_3, window_bounds = array<i64: 8, 16, 64>}]} {
    %c0 = arith.constant 0 : index
    %c0_0 = arith.constant 0 : index
    %0 = vector.load %arg1[%c0, %c0_0] : memref<8x8xi32, #tpu.memory_space<vmem>>, vector<8x8xi32>
    %1 = arith.sitofp %0 : vector<8x8xi32> to vector<8x8xf32>
    %c0_1 = arith.constant 0 : index
    %c0_2 = arith.constant 0 : index
    %2 = vector.load %arg2[%c0_1, %c0_2] : memref<8x64xf32, #tpu.memory_space<vmem>>, vector<8x64xf32>
    %c0_3 = arith.constant 0 : index
    %c0_4 = arith.constant 0 : index
    %3 = vector.load %arg3[%c0_3, %c0_4] : memref<16x8xf32, #tpu.memory_space<vmem>>, vector<16x8xf32>
    %4 = vector.shape_cast %1 : vector<8x8xf32> to vector<8x8x1xf32>
    %5 = vector.shape_cast %2 : vector<8x64xf32> to vector<1x8x64xf32>
    %6 = vector.broadcast %4 : vector<8x8x1xf32> to vector<8x8x64xf32>
    %7 = vector.broadcast %5 : vector<1x8x64xf32> to vector<8x8x64xf32>
    %8 = arith.mulf %6, %7 : vector<8x8x64xf32>
    %9 = arith.negf %8 : vector<8x8x64xf32>
    %10 = math.exp %9 : vector<8x8x64xf32>
    %cst = arith.constant 1.000000e+00 : f32
    %11 = vector.broadcast %cst : f32 to vector<8x8x64xf32>
    %12 = arith.addf %11, %10 : vector<8x8x64xf32>
    %13 = arith.divf %11, %12 : vector<8x8x64xf32>
    %14 = arith.mulf %8, %13 : vector<8x8x64xf32>
    %15 = vector.shape_cast %3 : vector<16x8xf32> to vector<1x16x8xf32>
    %16 = vector.shape_cast %15 : vector<1x16x8xf32> to vector<1x16x8xf32>
    %17 = vector.broadcast %16 : vector<1x16x8xf32> to vector<8x16x8xf32>
    %cst_5 = arith.constant dense<0.000000e+00> : vector<8x16x64xf32>
    %18 = tpu.matmul %17, %14, %cst_5 {dimension_numbers = #tpu.dot_dimension_numbers<[2], [1], [1], [2], [0, 0, 0, 1, 1, 2], [0], [0]>} : vector<8x16x8xf32>, vector<8x8x64xf32>, vector<8x16x64xf32> -> vector<8x16x64xf32>
    %c0_6 = arith.constant 0 : index
    %c0_7 = arith.constant 0 : index
    %c0_8 = arith.constant 0 : index
    %19 = vector.load %arg4[%c0_6, %c0_7, %c0_8] : memref<8x16x64xf32, #tpu.memory_space<vmem>>, vector<8x16x64xf32>
    tpu.vector_store %arg4[%c0_6, %c0_7, %c0_8], %18 {strides = array<i32>} : memref<8x16x64xf32, #tpu.memory_space<vmem>>, vector<8x16x64xf32>,
    return
  }
  func.func @transform_0(%arg0: i32) -> (i32, i32) {
    %c0_i32 = arith.constant 0 : i32
    %c0_i32_0 = arith.constant 0 : i32
    return %arg0, %c0_i32 : i32, i32
  }
  func.func @transform_1(%arg0: i32) -> (i32, i32) {
    %c0_i32 = arith.constant 0 : i32
    %c0_i32_0 = arith.constant 0 : i32
    %c0_i32_1 = arith.constant 0 : i32
    return %c0_i32, %c0_i32_0 : i32, i32
  }
  func.func @transform_2(%arg0: i32) -> (i32, i32) {
    %c0_i32 = arith.constant 0 : i32
    %c0_i32_0 = arith.constant 0 : i32
    %c0_i32_1 = arith.constant 0 : i32
    return %c0_i32, %c0_i32_0 : i32, i32
  }
  func.func @transform_3(%arg0: i32) -> (i32, i32, i32) {
    %c0_i32 = arith.constant 0 : i32
    %c0_i32_0 = arith.constant 0 : i32
    %c0_i32_1 = arith.constant 0 : i32
    return %arg0, %c0_i32, %c0_i32_0 : i32, i32, i32
  }
}

</mosaic_0001>

<bundles_post_ra>
// kernel: attr_embedding.1
= control target key start
LH: loop header
LB: loop body
LE: loop exit
PB: predicated region body
PF: predicated region fallthrough
CT: control target
= control target key end

     0   :  { %s773_s12 = smov 0   ;;  %s970_s0 = inlined_call_operand.vmem [shape: s32[16,8], index: 0, kind: input, shape index: {}]   ;;  %s971_s1 = inlined_call_operand.vmem [shape: f32[8,64], index: 1, kind: input, shape index: {}]   ;;  %s972_s2 = inlined_call_operand.vmem [shape: f32[16,8], index: 2, kind: input, shape index: {}]   ;;  %s973_s3 = inlined_call_operand.vmem [shape: f32[16,16,64], index: 3, kind: output, shape index: {}]  }
   0x1 LB: > { %s779_s13 = sadd.s32 4294967295, %s751_s12   ;;  %p670_p0 = scmp.ge.s32.totalorder %s751_s12, 1  ;;  %s751_s12 = sphi %s773_s12, %s13_s12  }
   0x2   : > { %p136_p1 = scmp.lt.s32.totalorder %s751_s12, 3 }
   0x4   : > { %p137_p2 = pnand %p670_p0, %p136_p1 }
   0x5   : > { %p160_p3 = scmp.lt.s32.totalorder (!%p137_p2), %s779_s13, 1  ;;  %s672_s25 = sshll.u32 (!%p137_p2), %s779_s13, 3 }
   0x6   : > { %140 = sbr.rel (%p137_p2) target bundleno = 339 (0x153), region = 32  ;;  %p165_p4 = scmp.lt.s32.totalorder (!%p137_p2), %s672_s25, 15 }
   0xb   : > { %v177_v0 = vlaneseq  ;;  %s161_s14 = scalar_select %p160_p3, %s779_s13, 1  ;;  %v173_v12 = vld [vmem:[%s971_s1] sm:$0xff] }
   0xc   : > { %s981_s25 = smov (!%p165_p4, %s672_s25), 15 }
   0xd   : > { %v178_v1 = vshrl.u32 %v177_v0, 7  ;;  %s671_s15 = sshll.u32 %s161_s14, 3  ;;  %s701_s26 = sshll.u32 %s981_s25, 4 }
   0xe   : > { %s163_s18 = scalar_lea.vmem %s970_s0, %s671_s15  ;;  %s933_s29 = scalar_lea.vmem %s973_s3, %s701_s26 }
   0xf   : > { %712 = vset.pattern.permute.xlu2 %v178_v1  ;;  %711 = vset.pattern.permute.xlu1 %v178_v1  ;;  %v171_v2 = vld [vmem:[%s163_s18] sm:$0xff] }
  0x10   : > { %710 = vset.pattern.permute.xlu0 %v178_v1  ;;  %v172_v3 = vcvt.s32.f32 %v171_v2 }
  0x12   : > { %v218_v4 = vperm.slane %v172_v3, 6  ;;  %v190_v5 = vperm.slane %v172_v3, 2  ;;  %v176_v6 = vperm.slane %v172_v3, 0  ;;  %v225_v7 = vperm.slane %v172_v3, 7 }
  0x13   : > { %v183_v8 = vperm.slane %v172_v3, 1  ;;  %v197_v9 = vperm.slane %v172_v3, 3  ;;  %v211_v10 = vperm.slane %v172_v3, 5  ;;  %v204_v11 = vperm.slane %v172_v3, 4 }
  0x17   : > { %223 = vperm.xlu2 %712, %v218_v4   ;;  %181 = vperm.xlu1 %711, %v176_v6  }
  0x18   : > { %195 = vperm.xlu0 %710, %v190_v5  }
  0x1f   : > { %230 = vperm.xlu2 %712, %v225_v7   ;;  %188 = vperm.xlu1 %711, %v183_v8  }
  0x20   : > { %202 = vperm.xlu0 %710, %v197_v9  }
  0x27   : > { %216 = vperm.xlu1 %711, %v211_v10  }
  0x28   : > { %209 = vperm.xlu0 %710, %v204_v11  }
  0x71   : > { %v224_v13 = vpop.permute.xlu2 %223 }
  0x72   : > { %v791_v14 = vmul.f32 %v224_v13, %v173_v12 }
  0x74   : > { %v681_v15 = vmul.f32 -1.442695, %v791_v14 }
  0x76   : > { %713 = vpow2.f32 %v681_v15 }
  0x79   : > { %v231_v16 = vpop.permute.xlu2 %230 }
  0x7a   : > { %v794_v18 = vmul.f32 %v231_v16, %v173_v12 }
  0x7c   : > { %v714_v17 = vpop.eup %713  ;;  %v682_v20 = vmul.f32 -1.442695, %v794_v18 }
  0x7d   : > { %v270_v19 = vadd.f32 1.0, %v714_v17 }
  0x7f   : > { %715 = vrcp.f32 %v270_v19  ;;  %vm367_vm0 = vweird.f32 %v270_v19  ;;  %v373_v43 = vand.u32 2147483648, %v270_v19  ;;  %v371_v46 = vand.u32 2147483647, %v270_v19 }
  0x80   : > { %717 = vpow2.f32 %v682_v20 }
  0x81   : > { %v374_v52 = vor.u32 1.1754944e-38, %v373_v43  ;;  %vm372_vm3 = vcmp.eq.f32.partialorder %v371_v46, 8.507059e+37 }
  0x85   : > { %v716_v21 = vpop.eup %715 }
  0x86   : > { %v718_v25 = vpop.eup %717  ;;  %v363_v28 = vmul.f32 %v716_v21, %v270_v19  ;;  %vm368_vm1 = vweird.f32 %v716_v21 }
  0x87   : > { %v803_v30 = vadd.f32 1.0, %v718_v25  ;;  %vm817_vm2 = vmor %vm367_vm0, %vm368_vm1  ;;  %vm400_vm0 = vcmask 64512  }
  0x88   : > { %v364_v31 = vsub.f32 1.0, %v363_v28 }
  0x89   : > { %v182_v22 = vpop.permute.xlu1 %181  ;;  %vm382_vm4 = vweird.f32 %v803_v30  ;;  %v386_v62 = vand.u32 2147483647, %v803_v30 }
  0x8a   : > { %v196_v23 = vpop.permute.xlu0 %195  ;;  %v797_v24 = vmul.f32 %v182_v22, %v173_v12  ;;  %v365_v38 = vmul.f32 %v716_v21, %v364_v31 }
  0x8b   : > { %v799_v26 = vmul.f32 %v196_v23, %v173_v12  ;;  %vm875_vm1 = vcmp.eq.f32.partialorder %v386_v62, 8.507059e+37 }
  0x8c   : > { %v675_v27 = vmul.f32 -1.442695, %v797_v24  ;;  %v366_v45 = vadd.f32 %v716_v21, %v365_v38 }
  0x8d   : > { %v677_v29 = vmul.f32 -1.442695, %v799_v26 }
  0x8e   : > { %719 = vpow2.f32 %v675_v27  ;;  %v370_v56 = vsel %vm817_vm2, %v716_v21, %v366_v45 }
  0x8f   : > { %721 = vpow2.f32 %v677_v29  ;;  %v375_v1 = vsel %vm372_vm3, %v374_v52, %v370_v56 }
  0x90   : > { %723 = vrcp.f32 %v803_v30  ;;  %v398_v16 = vmul.f32 %v375_v1, %v791_v14 }
  0x91   : > { %v189_v32 = vpop.permute.xlu1 %188 }
  0x92   : > { %v203_v33 = vpop.permute.xlu0 %202  ;;  %v806_v34 = vmul.f32 %v189_v32, %v173_v12 }
  0x93   : > { %v808_v35 = vmul.f32 %v203_v33, %v173_v12 }
  0x94   : > { %v720_v36 = vpop.eup %719  ;;  %v676_v37 = vmul.f32 -1.442695, %v806_v34 }
  0x95   : > { %v722_v39 = vpop.eup %721  ;;  %v264_v40 = vadd.f32 1.0, %v720_v36  ;;  %v678_v41 = vmul.f32 -1.442695, %v808_v35 }
  0x96   : > { %v812_v42 = vadd.f32 1.0, %v722_v39  ;;  %725 = vpow2.f32 %v676_v37  ;;  %v814_v44 = vpop.eup %723 }
  0x97   : > { %727 = vrcp.f32 %v264_v40  ;;  %v378_v53 = vmul.f32 %v814_v44, %v803_v30  ;;  %vm277_vm5 = vweird.f32 %v264_v40  ;;  %v281_v5 = vand.u32 2147483647, %v264_v40 }
  0x98   : > { %729 = vrcp.f32 %v812_v42  ;;  %v283_v6 = vand.u32 2147483648, %v264_v40  ;;  %v311_v8 = vand.u32 2147483647, %v812_v42  ;;  %v313_v10 = vand.u32 2147483648, %v812_v42 }
  0x99   : > { %731 = vpow2.f32 %v678_v41  ;;  %v217_v47 = vpop.permute.xlu1 %216  ;;  %v379_v2 = vsub.f32 1.0, %v378_v53  ;;  %vm383_vm8 = vweird.f32 %v814_v44  ;;  %vm307_vm9 = vweird.f32 %v812_v42 }
  0x9a   : > { %v210_v49 = vpop.permute.xlu0 %209  ;;  %v821_v50 = vmul.f32 %v217_v47, %v173_v12  ;;  %vm282_vm11 = vcmp.eq.f32.partialorder %v281_v5, 8.507059e+37  ;;  %v284_v21 = vor.u32 1.1754944e-38, %v283_v6  ;;  %vm312_vm13 = vcmp.eq.f32.partialorder %v311_v8, 8.507059e+37  ;;  %vm865_vm14 = vmor %vm382_vm4, %vm383_vm8 }
  0x9b   : > { %v823_v51 = vmul.f32 %v210_v49, %v173_v12  ;;  %v388_v12 = vand.u32 2147483648, %v803_v30  ;;  %v380_v17 = vmul.f32 %v814_v44, %v379_v2  ;;  %v314_v27 = vor.u32 1.1754944e-38, %v313_v10 }
  0x9c   : > { %v726_v54 = vpop.eup %725  ;;  %v680_v55 = vmul.f32 -1.442695, %v821_v50 }
  0x9d   : > { %v728_v57 = vpop.eup %727  ;;  %v830_v58 = vadd.f32 1.0, %v726_v54  ;;  %v679_v59 = vmul.f32 -1.442695, %v823_v51  ;;  %v381_v38 = vadd.f32 %v814_v44, %v380_v17  ;;  %v389_v30 = vor.u32 1.1754944e-38, %v388_v12 }
  0x9e   : > { %v730_v60 = vpop.eup %729  ;;  %733 = vpow2.f32 %v680_v55  ;;  %v273_v61 = vmul.f32 %v728_v57, %v264_v40  ;;  %vm278_vm6 = vweird.f32 %v728_v57 }
  0x9f   : > { %v732_v63 = vpop.eup %731  ;;  %735 = vrcp.f32 %v830_v58  ;;  %v303_v0 = vmul.f32 %v730_v60, %v812_v42  ;;  %vm308_vm7 = vweird.f32 %v730_v60  ;;  %vm279_vm10 = vmor %vm277_vm5, %vm278_vm6  ;;  %v298_v40 = vand.u32 2147483648, %v830_v58 }
  0xa0   : > { %v837_v3 = vadd.f32 1.0, %v732_v63  ;;  %737 = vpow2.f32 %v679_v59  ;;  %v274_v4 = vsub.f32 1.0, %v273_v61  ;;  %vm309_vm12 = vmor %vm307_vm9, %vm308_vm7  ;;  %v296_v43 = vand.u32 2147483647, %v830_v58 }
  0xa1   : > { %v304_v7 = vsub.f32 1.0, %v303_v0  ;;  %vm292_vm2 = vweird.f32 %v830_v58  ;;  %v385_v49 = vsel %vm865_vm14, %v814_v44, %v381_v38  ;;  %v299_v53 = vor.u32 1.1754944e-38, %v298_v40 }
  0xa2   : > { %739 = vrcp.f32 %v837_v3  ;;  %v275_v9 = vmul.f32 %v728_v57, %v274_v4  ;;  %v328_v48 = vand.u32 2147483648, %v837_v3  ;;  %v326_v55 = vand.u32 2147483647, %v837_v3 }
  0xa3   : > { %v305_v11 = vmul.f32 %v730_v60, %v304_v7  ;;  %vm297_vm5 = vcmp.eq.f32.partialorder %v296_v43, 8.507059e+37  ;;  %vm322_vm6 = vweird.f32 %v837_v3  ;;  %v390_v44 = vsel %vm875_vm1, %v389_v30, %v385_v49 }
  0xa4   : > { %v734_v13 = vpop.eup %733  ;;  %v276_v15 = vadd.f32 %v728_v57, %v275_v9  ;;  %v329_v62 = vor.u32 1.1754944e-38, %v328_v48  ;;  %vm327_vm8 = vcmp.eq.f32.partialorder %v326_v55, 8.507059e+37  ;;  %v399_v8 = vmul.f32 %v390_v44, %v794_v18 }
  0xa5   : > { %v736_v19 = vpop.eup %735  ;;  %v847_v20 = vadd.f32 1.0, %v734_v13  ;;  %v306_v22 = vadd.f32 %v730_v60, %v305_v11 }
  0xa6   : > { %v738_v23 = vpop.eup %737  ;;  %v280_v25 = vsel %vm279_vm10, %v728_v57, %v276_v15  ;;  %v288_v28 = vmul.f32 %v736_v19, %v830_v58  ;;  %vm293_vm15 = vweird.f32 %v736_v19 }
  0xa7   : > { %v852_v29 = vadd.f32 1.0, %v738_v23  ;;  %741 = vrcp.f32 %v847_v20  ;;  %v285_v14 = vsel %vm282_vm11, %v284_v21, %v280_v25  ;;  %v310_v31 = vsel %vm309_vm12, %v730_v60, %v306_v22  ;;  %vm294_vm3 = vmor %vm292_vm2, %vm293_vm15 }
  0xa8   : > { %v740_v32 = vpop.eup %739  ;;  %v392_v33 = vmul.f32 %v285_v14, %v797_v24  ;;  %v315_v36 = vsel %vm312_vm13, %v314_v27, %v310_v31  ;;  %v289_v37 = vsub.f32 1.0, %v288_v28  ;;  %v356_v2 = vand.u32 2147483647, %v847_v20 }
  0xa9   : > { %743 = vrcp.f32 %v852_v29  ;;  %v394_v39 = vmul.f32 %v315_v36, %v799_v26  ;;  %v318_v41 = vmul.f32 %v740_v32, %v837_v3  ;;  %v873_v26 = vld [vmem:[%s972_s2] sm:$0xff]  ;;  %vm323_vm4 = vweird.f32 %v740_v32 }
  0xaa   : > { %422 = vmatpush.msra.mxu0 %v392_v33  ;;  %v290_v24 = vmul.f32 %v736_v19, %v289_v37  ;;  %vm324_vm7 = vmor %vm322_vm6, %vm323_vm4  ;;  %v358_v4 = vand.u32 2147483648, %v847_v20  ;;  %v343_v9 = vand.u32 2147483648, %v852_v29  ;;  %vm352_vm10 = vweird.f32 %v847_v20 }
  0xab   : > { %468 = vmatpush.msra.mxu2 %v394_v39  ;;  %v319_v45 = vsub.f32 1.0, %v318_v41  ;;  %683 = vmatmul.msk.f32.vlgmr.msra.gmra.mxu0 %vm400_vm0, %v873_v26  ;;  %v341_v11 = vand.u32 2147483647, %v852_v29  ;;  %vm337_vm13 = vweird.f32 %v852_v29  ;;  %vm357_vm14 = vcmp.eq.f32.partialorder %v356_v2, 8.507059e+37 }
  0xac   : > { %v291_v47 = vadd.f32 %v736_v19, %v290_v24  ;;  %687 = vmatmul.msk.f32.vlgmr.msra.gmra.mxu2 %vm400_vm0, %v873_v26  ;;  %v359_v13 = vor.u32 1.1754944e-38, %v358_v4  ;;  %v344_v15 = vor.u32 1.1754944e-38, %v343_v9  ;;  %vm591_vm2 = vcmask 523264  }
  0xad   : > { %560 = vmatpush.msrb.mxu2 %v398_v16  ;;  %v742_v52 = vpop.eup %741  ;;  %v320_v54 = vmul.f32 %v740_v32, %v319_v45  ;;  %vm342_vm1 = vcmp.eq.f32.partialorder %v341_v11, 8.507059e+37 }
  0xae   : > { %v295_v56 = vsel %vm294_vm3, %v736_v19, %v291_v47  ;;  %v348_v57 = vmul.f32 %v742_v52, %v847_v20  ;;  %vm353_vm9 = vweird.f32 %v742_v52 }
  0xaf   : > { %v744_v58 = vpop.eup %743  ;;  %v300_v59 = vsel %vm297_vm5, %v299_v53, %v295_v56  ;;  %v321_v60 = vadd.f32 %v740_v32, %v320_v54  ;;  %vm354_vm12 = vmor %vm352_vm10, %vm353_vm9 }
  0xb0   : > { %v393_v61 = vmul.f32 %v300_v59, %v806_v34  ;;  %v333_v63 = vmul.f32 %v744_v58, %v852_v29  ;;  %v349_v0 = vsub.f32 1.0, %v348_v57  ;;  %v175_v34 = vld [vmem:[%s972_s2 + $0x8] sm:$0xff]  ;;  %vm338_vm11 = vweird.f32 %v744_v58 }
  0xb1   : > { %v325_v1 = vsel %vm324_vm7, %v740_v32, %v321_v60  ;;  %vm339_vm15 = vmor %vm337_vm13, %vm338_vm11 }
  0xb2   : > { %445 = vmatpush.msra.mxu1 %v393_v61  ;;  %v330_v5 = vsel %vm327_vm8, %v329_v62, %v325_v1  ;;  %v334_v6 = vsub.f32 1.0, %v333_v63  ;;  %v350_v3 = vmul.f32 %v742_v52, %v349_v0 }
  0xb3   : > { %v395_v7 = vmul.f32 %v330_v5, %v808_v35  ;;  %685 = vmatmul.msk.f32.vlgmr.msra.gmra.mxu1 %vm400_vm0, %v873_v26  ;;  %684 = vmatmul.msk.f32.gmra.mxu0 %vm400_vm0, %v175_v34 }
  0xb4   : > { %v335_v10 = vmul.f32 %v744_v58, %v334_v6  ;;  %v351_v12 = vadd.f32 %v742_v52, %v350_v3  ;;  %688 = vmatmul.msk.f32.gmra.mxu2 %vm400_vm0, %v175_v34 }
  0xb5   : > { %491 = vmatpush.msra.mxu3 %v395_v7 }
  0xb6   : > { %v336_v18 = vadd.f32 %v744_v58, %v335_v10  ;;  %v355_v35 = vsel %vm354_vm12, %v742_v52, %v351_v12  ;;  %689 = vmatmul.msk.f32.vlgmr.msra.gmra.mxu3 %vm400_vm0, %v873_v26 }
  0xb7   : > { %583 = vmatpush.msrb.mxu3 %v399_v8  ;;  %v360_v16 = vsel %vm357_vm14, %v359_v13, %v355_v35 }
  0xb8   : > { %v340_v17 = vsel %vm339_vm15, %v744_v58, %v336_v18  ;;  %v397_v19 = vmul.f32 %v360_v16, %v821_v50 }
  0xb9   : > { %v345_v20 = vsel %vm342_vm1, %v344_v15, %v340_v17 }
  0xba   : > { %v396_v21 = vmul.f32 %v345_v20, %v823_v51  ;;  %537 = vmatpush.msrb.mxu1 %v397_v19 }
  0xbb   : > { %686 = vmatmul.msk.f32.gmra.mxu1 %vm400_vm0, %v175_v34 }
  0xbc   : > { %514 = vmatpush.msrb.mxu0 %v396_v21  ;;  %695 = vmatmul.msk.f32.vlgmr.msrb.gmra.mxu2 %vm400_vm0, %v873_v26 }
  0xbd   : > { %691 = vmatmul.msk.f32.vlgmr.msrb.gmra.mxu0 %vm400_vm0, %v873_v26 }
  0xbe   : > { %690 = vmatmul.msk.f32.gmra.mxu3 %vm400_vm0, %v175_v34 }
  0xc3   : > { %693 = vmatmul.msk.f32.vlgmr.msrb.gmra.mxu1 %vm400_vm0, %v873_v26 }
  0xc4   : > { %696 = vmatmul.msk.f32.gmra.mxu2 %vm400_vm0, %v175_v34 }
  0xc5   : > { %692 = vmatmul.msk.f32.gmra.mxu0 %vm400_vm0, %v175_v34 }
  0xc6   : > { %697 = vmatmul.msk.f32.vlgmr.msrb.gmra.mxu3 %vm400_vm0, %v873_v26 }
  0xcb   : > { %694 = vmatmul.msk.f32.gmra.mxu1 %vm400_vm0, %v175_v34 }
  0xce   : > { %698 = vmatmul.msk.f32.gmra.mxu3 %vm400_vm0, %v175_v34 }
 0x128   : > { %v424_v50 = vpop.f32.mrf.mxu0 }
 0x129   : > { %592 = vst.msk [vmem:[%s933_s29] sm:$0xff] %vm591_vm2, %v424_v50 }
 0x12f   : > { %v470_v22 = vpop.f32.mrf.mxu2 }
 0x130   : > { %v447_v51 = vpop.f32.mrf.mxu1  ;;  %v427_v23 = vpop.f32.mrf.mxu0  ;;  %596 = vst.msk [vmem:[%s933_s29 + $0x20] sm:$0xff] %vm591_vm2, %v470_v22 }
 0x131   : > { %594 = vst.msk [vmem:[%s933_s29 + $0x10] sm:$0xff] %vm591_vm2, %v447_v51 }
 0x132   : > { %593 = vst.msk [vmem:[%s933_s29 + $0x8] sm:$0xff] %vm591_vm2, %v427_v23 }
 0x137   : > { %v473_v27 = vpop.f32.mrf.mxu2 }
 0x138   : > { %v450_v25 = vpop.f32.mrf.mxu1  ;;  %597 = vst.msk [vmem:[%s933_s29 + $0x28] sm:$0xff] %vm591_vm2, %v473_v27 }
 0x139   : > { %595 = vst.msk [vmem:[%s933_s29 + $0x18] sm:$0xff] %vm591_vm2, %v450_v25  ;;  %v493_v28 = vpop.f32.mrf.mxu3 }
 0x13a   : > { %v516_v29 = vpop.f32.mrf.mxu0  ;;  %598 = vst.msk [vmem:[%s933_s29 + $0x30] sm:$0xff] %vm591_vm2, %v493_v28 }
 0x13b   : > { %600 = vst.msk [vmem:[%s933_s29 + $0x40] sm:$0xff] %vm591_vm2, %v516_v29 }
 0x13f   : > { %v562_v31 = vpop.f32.mrf.mxu2 }
 0x140   : > { %v539_v14 = vpop.f32.mrf.mxu1  ;;  %604 = vst.msk [vmem:[%s933_s29 + $0x60] sm:$0xff] %vm591_vm2, %v562_v31 }
 0x141   : > { %602 = vst.msk [vmem:[%s933_s29 + $0x50] sm:$0xff] %vm591_vm2, %v539_v14  ;;  %v496_v32 = vpop.f32.mrf.mxu3 }
 0x142   : > { %v519_v33 = vpop.f32.mrf.mxu0  ;;  %599 = vst.msk [vmem:[%s933_s29 + $0x38] sm:$0xff] %vm591_vm2, %v496_v32 }
 0x143   : > { %601 = vst.msk [vmem:[%s933_s29 + $0x48] sm:$0xff] %vm591_vm2, %v519_v33 }
 0x147   : > { %v565_v37 = vpop.f32.mrf.mxu2 }
 0x148   : > { %v542_v36 = vpop.f32.mrf.mxu1  ;;  %605 = vst.msk [vmem:[%s933_s29 + $0x68] sm:$0xff] %vm591_vm2, %v565_v37 }
 0x149   : > { %603 = vst.msk [vmem:[%s933_s29 + $0x58] sm:$0xff] %vm591_vm2, %v542_v36  ;;  %v585_v38 = vpop.f32.mrf.mxu3 }
 0x14a   : > { %606 = vst.msk [vmem:[%s933_s29 + $0x70] sm:$0xff] %vm591_vm2, %v585_v38 }
 0x151   : > { %v588_v39 = vpop.f32.mrf.mxu3 }
 0x152   : > { %607 = vst.msk [vmem:[%s933_s29 + $0x78] sm:$0xff] %vm591_vm2, %v588_v39 }
 0x153 PF: > { %s13_s12 = sadd.s32 1, %s751_s12  }
 0x154   : > { %p10_p5 = scmp.ge.s32.totalorder %s13_s12, 4  }
 0x156   :  { %12 = sbr.rel (!%p10_p5) target bundleno = 1 (0x1), region = 62 }

</bundles_post_ra>
